<compile_context>
chip_gen: v6e
topology: v6e:2x2x1
jax: 0.10.0
libtpu: 0.0.40
codegen_flags: <defaults>
</compile_context>

<pallas_src>
import jax
import jax.numpy as jnp
from jax.experimental import pallas as pl
from jax.experimental.pallas import tpu as pltpu

# TODO(synk): the full BERT encoder (multi-head attention stack) passed in as
# `bert_model` is external to this module; a synthetic embedding lookup +
# dense projection stands in for it here.


def sentence_transformer_kernel(tok_ref, mask_ref, cnt_ref, w_ref, b_ref,
                                out_ref, acc_sum):
    """One (batch-tile, seq-tile) grid step.

    tok_ref : (Bt, St, E) bf16  token embeddings tile
    mask_ref: (Bt, St)    bf16  attention-mask tile (0/1, exact in bf16)
    cnt_ref : (Bt, 1)     f32   per-row mask counts (precomputed in glue)
    w_ref   : (E, H)      f32   projection weight (synthetic "bert" head)
    b_ref   : (1, H)      f32   projection bias
    out_ref : (Bt, H)     f32   L2-normalized sentence embeddings
    acc_sum : (Bt, E)     f32   running masked token sum (VMEM scratch)
    """
    k = pl.program_id(1)

    @pl.when(k == 0)
    def _init():
        acc_sum[...] = jnp.zeros_like(acc_sum)

    mask = mask_ref[...]                                         # (Bt, St) bf16
    tok = tok_ref[...]                                           # (Bt, St, E) bf16

    # Masked token-sum for this sequence tile: per batch row a (1,St)@(St,E)
    # MXU matvec (batched matmul with M=1), accumulated in f32.  Hidden under
    # the tok DMA for any reasonable tile size.
    bt, st = mask.shape
    partial = jnp.einsum("bqs,bse->bqe", mask.reshape(bt, 1, st), tok,
                         preferred_element_type=jnp.float32)     # (Bt, 1, E)
    acc_sum[...] += partial[:, 0, :]

    @pl.when(k == pl.num_programs(1) - 1)
    def _finalize():
        cnt = cnt_ref[...]                                       # (Bt, 1) f32
        # Linear head applied to the pooled sum (project-after-pool); the bias
        # picks up a factor of the mask count.  Runs once per batch tile, so
        # keep it in full f32 precision.
        proj = jnp.dot(acc_sum[...], w_ref[...],
                       preferred_element_type=jnp.float32)       # (Bt, H)
        proj = proj + cnt * b_ref[...]
        # torch.clamp(mask.sum(1), min=1e-9); exact division.
        pooled = proj / jnp.maximum(cnt, 1e-9)
        # F.normalize(p=2, dim=1, eps=1e-12) == pooled * rsqrt(max(sumsq, eps^2))
        sumsq = jnp.sum(pooled * pooled, axis=1, keepdims=True)
        inv_norm = jax.lax.rsqrt(jnp.maximum(sumsq, 1e-24))
        out_ref[...] = (pooled * inv_norm).astype(out_ref.dtype)


def _vmem_capacity_bytes():
    """Physical VMEM of the current TPU generation (fallback: 128 MiB)."""
    try:
        info = pltpu.get_tpu_info()
        cap = getattr(info, "vmem_capacity_bytes", None)
        if cap:
            return int(cap)
    except Exception:
        pass
    return 128 * 1024 * 1024


def _pick_batch_tile(B, target=64):
    # Largest multiple of 8 dividing B, <= target, with at least 2 batch tiles
    # so the "parallel" grid axis can split across v7x's two TensorCores.
    for cand in range(min(target, B), 7, -8):
        if B % cand == 0 and B // cand >= 2:
            return cand
    return B  # small batch: single full-batch tile


def _vmem_bytes(bt, st, E, H):
    # Conservative estimate of resident kernel buffers (2-deep pipeline).
    tok = 2 * bt * st * E * 2           # double-buffered bf16 token tile
    mask = 2 * bt * st * 2              # double-buffered bf16 mask tile
    small = 2 * (E * H * 4 + H * 4 + bt * 4 + bt * H * 4)   # W, bias, cnt, out
    scratch = bt * E * 4                # accumulator
    return tok + mask + small + scratch


def _pick_seq_tile(S, bt, E, H, budget, target=512):
    # Largest sequence tile (multiple of 128 dividing S, or S itself) that is
    # <= target and fits the per-generation VMEM buffer budget.
    cands = sorted({c for c in range(128, S + 1, 128) if S % c == 0} | {S},
                   reverse=True)
    preferred = [c for c in cands if c <= target] or [cands[-1]]
    for st in preferred:
        if _vmem_bytes(bt, st, E, H) <= budget:
            return st
    return preferred[-1]


def sentence_transformer_forward(input_ids, att_mask, emb_table, w, b,
                                 *, bt=None, st=None):
    """input_ids: (B, S) int32, att_mask: (B, S) int32 -> (B, H) f32."""
    B, S = input_ids.shape
    E = emb_table.shape[1]
    H = w.shape[1]

    # Per-generation VMEM budget: ~85% of physical for the Mosaic scoped
    # limit (v5e/v6e ~108 MiB, v7x ~54 MiB), ~75% of that for kernel buffers.
    vmem_cap = _vmem_capacity_bytes()
    vmem_limit = min(int(vmem_cap * 0.85), 127 * 1024 * 1024)
    buffer_budget = int(vmem_limit * 0.75)

    if bt is None:
        bt = _pick_batch_tile(B)
    if st is None:
        st = _pick_seq_tile(S, bt, E, H, buffer_budget)

    assert B % bt == 0 and S % st == 0, "tile sizes must divide (B, S)"
    assert bt % 8 == 0 or bt == B
    assert st % 128 == 0 or st == S

    # Glue (stands in for the external BERT encoder): embedding lookup,
    # emitted in bf16 to halve the dominant HBM stream.
    # TODO(synk): this gather still materializes a (B, S, E) bf16 intermediate
    # in HBM that the kernel re-reads; an in-kernel gather (scalar-prefetched
    # ids + VMEM-resident / fp8 table) would remove that round trip but is not
    # relied on here.
    tok = emb_table.astype(jnp.bfloat16)[input_ids]              # (B, S, E)
    mask_bf16 = att_mask.astype(jnp.bfloat16)                    # (B, S)
    cnt = jnp.sum(att_mask, axis=1, dtype=jnp.float32).reshape(B, 1)
    w_f32 = w.astype(jnp.float32)
    b_f32 = b.astype(jnp.float32).reshape(1, H)

    grid = (B // bt, S // st)

    cost = pl.CostEstimate(
        flops=2 * B * S * E + 2 * B * E * H + 8 * B * H,
        transcendentals=B,
        bytes_accessed=(B * S * E * 2 + B * S * 2 + B * 4
                        + E * H * 4 + H * 4 + B * H * 4),
    )

    # Note: W / bias could be single-buffered (pipeline_mode=pl.Buffered(1))
    # since their index_map is constant; the budget above already accounts for
    # a double buffer, so the default pipelining is kept for robustness.
    return pl.pallas_call(
        sentence_transformer_kernel,
        out_shape=jax.ShapeDtypeStruct((B, H), jnp.float32),
        grid_spec=pltpu.PrefetchScalarGridSpec(
            num_scalar_prefetch=0,
            grid=grid,
            in_specs=[
                pl.BlockSpec((bt, st, E), lambda i, k: (i, k, 0)),   # tok
                pl.BlockSpec((bt, st), lambda i, k: (i, k)),         # mask
                pl.BlockSpec((bt, 1), lambda i, k: (i, 0)),          # counts
                pl.BlockSpec((E, H), lambda i, k: (0, 0)),           # W
                pl.BlockSpec((1, H), lambda i, k: (0, 0)),           # bias
            ],
            out_specs=pl.BlockSpec((bt, H), lambda i, k: (i, 0)),
            scratch_shapes=[
                pltpu.VMEM((bt, E), jnp.float32),
            ],
        ),
        compiler_params=pltpu.CompilerParams(
            dimension_semantics=("parallel", "arbitrary"),
            vmem_limit_bytes=vmem_limit,
        ),
        cost_estimate=cost,
    )(tok, mask_bf16, cnt, w_f32, b_f32)


def _reference(input_ids, att_mask, emb_table, w, b):
    tok = emb_table[input_ids]                                   # f32
    emb = jnp.einsum("bse,eh->bsh", tok, w) + b[0]
    m = att_mask.astype(emb.dtype)[..., None]
    pooled = jnp.sum(emb * m, axis=1) / jnp.maximum(jnp.sum(m, axis=1), 1e-9)
    n = jnp.sqrt(jnp.sum(pooled * pooled, axis=1, keepdims=True))
    return pooled / jnp.maximum(n, 1e-12)


if __name__ == "__main__":
    key = jax.random.PRNGKey(0)
    # Small but lane-aligned demo shapes (E, H multiples of 128; S tiled by 128).
    B, S, E, H, VOCAB = 16, 256, 128, 128, 512

    k1, k2, k3, k4 = jax.random.split(key, 4)
    emb_table = jax.random.normal(k1, (VOCAB, E), dtype=jnp.float32) * 0.1
    w = jax.random.normal(k2, (E, H), dtype=jnp.float32) * 0.1
    b = jax.random.normal(k3, (1, H), dtype=jnp.float32) * 0.01

    input_ids = jax.random.randint(k4, (B, S), 0, VOCAB, dtype=jnp.int32)
    # Variable-length sequences (padding at the end of each row).
    lengths = (jnp.arange(B, dtype=jnp.int32) * 17) % S + 1
    att_mask = (jnp.arange(S, dtype=jnp.int32)[None, :]
                < lengths[:, None]).astype(jnp.int32)

    out = sentence_transformer_forward(input_ids, att_mask, emb_table, w, b)
    out = jax.block_until_ready(out)

    ref = _reference(input_ids, att_mask, emb_table, w, b)
    assert out.shape == (B, H)
    # Token stream is bf16 (f32 accumulation) -> loose tolerance.
    assert jnp.allclose(out, ref, atol=2e-2, rtol=2e-2), "mismatch vs reference"
    # Rows must be unit-norm (F.normalize semantics).
    assert jnp.allclose(jnp.linalg.norm(out, axis=1), 1.0, atol=1e-3)

    print("KERNEL_OK")
</pallas_src>

<mosaic_0001>
module attributes {stable_mosaic.version = 11 : i64} {
  func.func @sentence_transformer_kernel(%arg0: i32, %arg1: i32, %arg2: memref<8x256x128xbf16, #tpu.memory_space<vmem>>, %arg3: memref<8x256xbf16, #tpu.memory_space<vmem>>, %arg4: memref<8x1xf32, #tpu.memory_space<vmem>>, %arg5: memref<128x128xf32, #tpu.memory_space<vmem>>, %arg6: memref<1x128xf32, #tpu.memory_space<vmem>>, %arg7: memref<8x128xf32, #tpu.memory_space<vmem>>, %arg8: memref<8x128xf32, #tpu.memory_space<vmem>>) attributes {dimension_semantics = [#tpu.dimension_semantics<parallel>, #tpu.dimension_semantics<arbitrary>], iteration_bounds = array<i64: 2, 1>, scalar_prefetch = 0 : i64, scratch_operands = 1 : i64, tpu.core_type = #tpu.core_type<tc>, window_params = [{transform_indices = @transform_0, window_bounds = array<i64: 8, 256, 128>}, {transform_indices = @transform_1, window_bounds = array<i64: 8, 256>}, {transform_indices = @transform_2, window_bounds = array<i64: 8, 1>}, {pipeline_mode = #tpu.pipeline_mode<synchronous>, transform_indices = @transform_3, window_bounds = array<i64: 128, 128>}, {pipeline_mode = #tpu.pipeline_mode<synchronous>, transform_indices = @transform_4, window_bounds = array<i64: 1, 128>}, {transform_indices = @transform_5, window_bounds = array<i64: 8, 128>}]} {
    %c0_i32 = arith.constant 0 : i32
    %0 = arith.cmpi eq, %arg1, %c0_i32 : i32
    %1 = arith.extui %0 : i1 to i32
    %c0_i32_0 = arith.constant 0 : i32
    %2 = arith.cmpi ne, %1, %c0_i32_0 : i32
    scf.if %2 {
      %cst_11 = arith.constant 0.000000e+00 : f32
      %14 = vector.broadcast %cst_11 : f32 to vector<8x128xf32>
      %c0_12 = arith.constant 0 : index
      %c0_13 = arith.constant 0 : index
      %15 = vector.load %arg8[%c0_12, %c0_13] : memref<8x128xf32, #tpu.memory_space<vmem>>, vector<8x128xf32>
      tpu.vector_store %arg8[%c0_12, %c0_13], %14 {strides = array<i32>} : memref<8x128xf32, #tpu.memory_space<vmem>>, vector<8x128xf32>,
    } else {
    }
    %c0 = arith.constant 0 : index
    %c0_1 = arith.constant 0 : index
    %3 = vector.load %arg3[%c0, %c0_1] : memref<8x256xbf16, #tpu.memory_space<vmem>>, vector<8x256xbf16>
    %c0_2 = arith.constant 0 : index
    %c0_3 = arith.constant 0 : index
    %c0_4 = arith.constant 0 : index
    %4 = vector.load %arg2[%c0_2, %c0_3, %c0_4] : memref<8x256x128xbf16, #tpu.memory_space<vmem>>, vector<8x256x128xbf16>
    %5 = vector.shape_cast %3 : vector<8x256xbf16> to vector<8x1x256xbf16>
    "tpu.trace_start"() <{level = 10 : i32, message = "bqs,bse->bqe"}> : () -> ()
    %cst = arith.constant dense<0.000000e+00> : vector<8x1x128xf32>
    %6 = tpu.matmul %5, %4, %cst {dimension_numbers = #tpu.dot_dimension_numbers<[2], [1], [1], [2], [0, 0, 0, 1, 1, 2], [0], [0]>} : vector<8x1x256xbf16>, vector<8x256x128xbf16>, vector<8x1x128xf32> -> vector<8x1x128xf32>
    "tpu.trace_stop"() : () -> ()
    %c0_5 = arith.constant 0 : index
    %c0_6 = arith.constant 0 : index
    %7 = vector.load %arg8[%c0_5, %c0_6] : memref<8x128xf32, #tpu.memory_space<vmem>>, vector<8x128xf32>
    %8 = vector.shape_cast %6 : vector<8x1x128xf32> to vector<8x128xf32>
    %9 = arith.addf %7, %8 : vector<8x128xf32>
    %c0_7 = arith.constant 0 : index
    %c0_8 = arith.constant 0 : index
    %10 = vector.load %arg8[%c0_7, %c0_8] : memref<8x128xf32, #tpu.memory_space<vmem>>, vector<8x128xf32>
    tpu.vector_store %arg8[%c0_7, %c0_8], %9 {strides = array<i32>} : memref<8x128xf32, #tpu.memory_space<vmem>>, vector<8x128xf32>,
    %c0_i32_9 = arith.constant 0 : i32
    %11 = arith.cmpi eq, %arg1, %c0_i32_9 : i32
    %12 = arith.extui %11 : i1 to i32
    %c0_i32_10 = arith.constant 0 : i32
    %13 = arith.cmpi ne, %12, %c0_i32_10 : i32
    scf.if %13 {
      %c0_11 = arith.constant 0 : index
      %c0_12 = arith.constant 0 : index
      %14 = vector.load %arg4[%c0_11, %c0_12] : memref<8x1xf32, #tpu.memory_space<vmem>>, vector<8x1xf32>
      %c0_13 = arith.constant 0 : index
      %c0_14 = arith.constant 0 : index
      %15 = vector.load %arg8[%c0_13, %c0_14] : memref<8x128xf32, #tpu.memory_space<vmem>>, vector<8x128xf32>
      %c0_15 = arith.constant 0 : index
      %c0_16 = arith.constant 0 : index
      %16 = vector.load %arg5[%c0_15, %c0_16] : memref<128x128xf32, #tpu.memory_space<vmem>>, vector<128x128xf32>
      %cst_17 = arith.constant dense<0.000000e+00> : vector<8x128xf32>
      %17 = tpu.matmul %15, %16, %cst_17 {dimension_numbers = #tpu.dot_dimension_numbers<[1], [0], [0], [1], [0, 0, 1, 1], [], []>} : vector<8x128xf32>, vector<128x128xf32>, vector<8x128xf32> -> vector<8x128xf32>
      %c0_18 = arith.constant 0 : index
      %c0_19 = arith.constant 0 : index
      %18 = vector.load %arg6[%c0_18, %c0_19] : memref<1x128xf32, #tpu.memory_space<vmem>>, vector<1x128xf32>
      %19 = vector.broadcast %14 : vector<8x1xf32> to vector<8x128xf32>
      %20 = vector.broadcast %18 : vector<1x128xf32> to vector<8x128xf32>
      %21 = arith.mulf %19, %20 : vector<8x128xf32>
      %22 = arith.addf %17, %21 : vector<8x128xf32>
      %cst_20 = arith.constant 9.99999971E-10 : f32
      %23 = vector.broadcast %cst_20 : f32 to vector<8x1xf32>
      %24 = arith.maximumf %14, %23 : vector<8x1xf32>
      %25 = vector.broadcast %24 : vector<8x1xf32> to vector<8x128xf32>
      %26 = arith.divf %22, %25 : vector<8x128xf32>
      %27 = arith.mulf %26, %26 : vector<8x128xf32>
      %cst_21 = arith.constant dense<0.000000e+00> : vector<8xf32>
      %28 = vector.multi_reduction <add>, %27, %cst_21 [1] : vector<8x128xf32> to vector<8xf32>
      %29 = vector.shape_cast %28 : vector<8xf32> to vector<8x1xf32>
      %cst_22 = arith.constant 1.000000e-24 : f32
      %30 = vector.broadcast %cst_22 : f32 to vector<8x1xf32>
      %31 = arith.maximumf %29, %30 : vector<8x1xf32>
      %32 = math.rsqrt %31 : vector<8x1xf32>
      %33 = vector.broadcast %32 : vector<8x1xf32> to vector<8x128xf32>
      %34 = arith.mulf %26, %33 : vector<8x128xf32>
      %c0_23 = arith.constant 0 : index
      %c0_24 = arith.constant 0 : index
      %35 = vector.load %arg7[%c0_23, %c0_24] : memref<8x128xf32, #tpu.memory_space<vmem>>, vector<8x128xf32>
      tpu.vector_store %arg7[%c0_23, %c0_24], %34 {strides = array<i32>} : memref<8x128xf32, #tpu.memory_space<vmem>>, vector<8x128xf32>,
    } else {
    }
    return
  }
  func.func @transform_0(%arg0: i32, %arg1: i32) -> (i32, i32, i32) {
    %c0_i32 = arith.constant 0 : i32
    %c0_i32_0 = arith.constant 0 : i32
    return %arg0, %arg1, %c0_i32 : i32, i32, i32
  }
  func.func @transform_1(%arg0: i32, %arg1: i32) -> (i32, i32) {
    %c0_i32 = arith.constant 0 : i32
    return %arg0, %arg1 : i32, i32
  }
  func.func @transform_2(%arg0: i32, %arg1: i32) -> (i32, i32) {
    %c0_i32 = arith.constant 0 : i32
    %c0_i32_0 = arith.constant 0 : i32
    return %arg0, %c0_i32 : i32, i32
  }
  func.func @transform_3(%arg0: i32, %arg1: i32) -> (i32, i32) {
    %c0_i32 = arith.constant 0 : i32
    %c0_i32_0 = arith.constant 0 : i32
    %c0_i32_1 = arith.constant 0 : i32
    return %c0_i32, %c0_i32_0 : i32, i32
  }
  func.func @transform_4(%arg0: i32, %arg1: i32) -> (i32, i32) {
    %c0_i32 = arith.constant 0 : i32
    %c0_i32_0 = arith.constant 0 : i32
    %c0_i32_1 = arith.constant 0 : i32
    return %c0_i32, %c0_i32_0 : i32, i32
  }
  func.func @transform_5(%arg0: i32, %arg1: i32) -> (i32, i32) {
    %c0_i32 = arith.constant 0 : i32
    %c0_i32_0 = arith.constant 0 : i32
    return %arg0, %c0_i32 : i32, i32
  }
}

</mosaic_0001>

<bundles_post_ra>
// kernel: tpu_custom_call.1
= control target key start
LH: loop header
LB: loop body
LE: loop exit
PB: predicated region body
PF: predicated region fallthrough
CT: control target
= control target key end

     0   :  { %s3243_s0 = inlined_call_operand.hbm [shape: bf16[16,256,128], index: 0, kind: input, shape index: {}]   ;;  %s3244_s1 = inlined_call_operand.vmem [shape: bf16[16,256], index: 1, kind: input, shape index: {}]   ;;  %s3245_s2 = inlined_call_operand.vmem [shape: f32[16,1], index: 2, kind: input, shape index: {}]   ;;  %s3246_s3 = inlined_call_operand.hbm [shape: f32[128,128], index: 3, kind: input, shape index: {}]   ;;  %s3247_s4 = inlined_call_operand.vmem [shape: f32[1,128], index: 4, kind: input, shape index: {}]   ;;  %s3248_s5 = inlined_call_operand.hbm [shape: f32[16,128], index: 5, kind: output, shape index: {}]  }
   0x1   :  { %3251 = sst [smem:[#allocation13_spill]] %s3246_s3 }
   0x2   :  { %10 = vsyncpa [#allocation4], 0 }
   0x3   :  { %12 = vsyncpa [#allocation4 + $0x1], 0 }
   0x4   :  { %13 = vsyncpa [#allocation7], 0 }
   0x5   :  { %14 = vsyncpa [#allocation5], 0 }
   0x6   :  { %16 = vsyncpa [#allocation5 + $0x1], 0  ;;  %s2869_s18 = smov 0   ;;  %s2871_s19 = smov 0  }
   0x7   :  { %s2873_s20 = smov 0   ;;  %s2875_s21 = smov 0  }
   0x8   :  { %s2877_s22 = smov 0   ;;  %s2879_s23 = smov 0  }
   0x9 LB: > { %s2089_s24 = sadd.s32 4294967295, %s2826_s23   ;;  %s2090_s25 = sadd.s32 4294967294, %s2826_s23   ;;  %s2826_s23 = sphi %s2879_s23, %s22_s23   ;;  %s2822_s22 = sphi %s2877_s22, %s3271_s22   ;;  %s2818_s21 = sphi %s2875_s21, %s3270_s21   ;;  %s2814_s20 = sphi %s2873_s20, %s3269_s20   ;;  %s2810_s19 = sphi %s2871_s19, %s3268_s19   ;;  %s2806_s18 = sphi %s2869_s18, %s3267_s18  }
   0xa   : > { %p56_p0 = scmp.ne.s32.totalorder %s2810_s19, %s2806_s18  ;;  %p2903_p1 = scmp.eq.s32.totalorder %s2089_s24, 0 }
   0xb   : > { %p2907_p2 = scmp.eq.s32.totalorder %s2089_s24, 1  ;;  %p182_p3 = scmp.eq.s32.totalorder %s2090_s25, 1 }
   0xc   : > { %p2913_p4 = por %p2903_p1, %p56_p0  ;;  %p2091_p5 = scmp.ge.s32.totalorder %s2826_s23, 1 }
   0xd   : > { %p2918_p6 = por %p182_p3, %p56_p0  ;;  %p189_p7 = scmp.lt.s32.totalorder %s2826_s23, 3 }
   0xe   : > { %s3254_s28 = scalar_select %p2913_p4, 1, 0 }
   0xf   : > { %s3255_s29 = scalar_select %p2918_p6, 1, 0 }
  0x10   : > { %p2923_p8 = pnand %p2091_p5, %p189_p7  ;;  %s2828_s6 = smov [#allocation6]  }
  0x11   : > { %s201_s7 = sshll.u32 %s2828_s6, 4  ;;  %s34_s9 = sadd.s32 1, %s2822_s22  ;;  %s202_s7 = int_to_ptr.vmem [resolvable:$true] %s201_s7 }
  0x12   : > { %p2482_p9 = pneg %p2923_p8  ;;  %s2699_s10 = scalar_lea.vmem %s202_s7, 2048 }
  0x13   : > { %p2700_p13 = scmp.ne.s32.totalorder %s202_s7, %s2699_s10  ;;  %p2707_p5 = scmp.lt.s32.totalorder %s202_s7, %s202_s7 }
  0x14   : > { %p2932_p11 = pnand %p2482_p9, %p2903_p1  ;;  %p2708_p7 = scmp.lt.s32.totalorder %s2699_s10, %s2699_s10 }
  0x16   : > { %p2690_p12 = pneg %p2932_p11  ;;  %p2709_p6 = por %p2708_p7, %p2707_p5 }
  0x18   : > { %p2702_p0 = pnand %p2700_p13, %p2690_p12 }
  0x1a   : > { %p2703_p3 = pneg %p2702_p0 }
  0x1c   : > { %p2710_p4 = pnand %p2709_p6, %p2703_p3 }
  0x1e   : > { %2713 = shalt.err (!%p2710_p4)
}
  0x1f   : > { %s2829_s11 = smov 128   ;;  %s2830_s12 = smov 8  }
  0x20   : > { %s3258_s3 = sld [smem:[#allocation13_spill]]  ;;  %p36_p6 = scmp.ge.s32.totalorder %s34_s9, 2 }
  0x21   : > { %s43_s15 = sadd.s32 1, %s2814_s20  ;;  %p50_p4 = scmp.ne.s32.totalorder %s2814_s20, %s2810_s19 }
  0x22   : > { %p51_p9 = scmp.eq.s32.totalorder %s2826_s23, 0  ;;  %s3273_s9 = smov (%p36_p6, %s34_s9), 0 }
  0x23   : > { %3259 = sst [smem:[#allocation12_spill]] %s3273_s9  ;;  %p2956_p13 = por %p2907_p2, %p50_p4 }
  0x24   : > { %p2950_p12 = por %p51_p9, %p50_p4  ;;  %s38_s24 = ssub.s32 %s2822_s22, %s3273_s9 }
  0x25   : > { %p2495_p0 = scmp.lt.s32.totalorder %s2826_s23, 2  ;;  %s218_s25 = sand.u32 1, %s2814_s20  }
  0x26   : > { %2485 = dma.hbm_to_vmem [thread:$0]  (!%p2932_p11), %s3258_s3, 2048, %s202_s7, [#allocation7], %s2829_s11, %s2829_s11, %s2830_s12  }
  0x27   : > { %p41_p11 = scmp.eq.s32.totalorder %s38_s24, 0  ;;  %s2094_s6 = sshll.u32 %s218_s25, 10 }
  0x28   : > { %s2244_s8 = sshll.u32 %s2822_s22, 14  ;;  %s222_s13 = scalar_lea.vmem [#allocation3], %s2094_s6 }
  0x29   : > { %s2965_s7 = scalar_select %p41_p11, %s2814_s20, %s43_s15  }
  0x2a   : > { %s231_s12 = scalar_lea.hbm %s3243_s0, %s2244_s8  ;;  %s232_s14 = sshll.u32 %s222_s13, 4  ;;  %s233_s14 = int_to_ptr.vmem [resolvable:$true] %s232_s14 }
  0x2b   : > { %p2973_p2 = pnand %p2495_p0, %p2950_p12  ;;  %s219_s3 = scalar_lea.sflag [#allocation4], %s218_s25 }
  0x2c   : > { %s2727_s24 = scalar_lea.vmem %s233_s14, 16384  ;;  %s2831_s15 = smov [#allocation3]  }
  0x2d   : > { %p2716_p3 = pneg %p2973_p2  ;;  %p2728_p5 = scmp.ne.s32.totalorder %s233_s14, %s2727_s24 }
  0x2e   : > { %s2732_s9 = sshll.u32 %s2831_s15, 4  ;;  %s2733_s9 = int_to_ptr.vmem [resolvable:$false] %s2732_s9 }
  0x2f   : > { %p2730_p7 = pnand %p2728_p5, %p2716_p3  ;;  %s2734_s8 = scalar_lea.vmem %s2733_s9, 32768 }
  0x30   : > { %p2735_p4 = scmp.lt.s32.totalorder %s233_s14, %s2733_s9  ;;  %p2736_p9 = scmp.lt.s32.totalorder %s2734_s8, %s2727_s24 }
  0x31   : > { %p2731_p6 = pneg %p2730_p7 }
  0x32   : > { %p2737_p11 = por %p2736_p9, %p2735_p4 }
  0x34   : > { %p2738_p10 = pnand %p2737_p11, %p2731_p6 }
  0x36   : > { %2741 = shalt.err (!%p2738_p10)
}
  0x37   : > { %s2832_s16 = smov 64   ;;  %s2833_s6 = smov 4  }
  0x38   : > { %2489 = dma.hbm_to_vmem [thread:$0]  (!%p2973_p2), %s231_s12, 16384, %s233_s14, %s219_s3, %s2832_s16, %s2832_s16, %s2833_s6  }
  0x39   : > { %264 = sbr.rel (%p2923_p8) target bundleno = 765 (0x2fd), region = 40  ;;  %s2984_s25 = sand.u32 (!%p2923_p8), 1, %s2810_s19  }
  0x3a   : > { %s2099_s10 = sshll.u32 (!%p2923_p8), %s2984_s25, 10  ;;  %s267_s9 = scalar_lea.sflag (!%p2923_p8), [#allocation4], %s2984_s25 }
  0x3b   : > { %s2988_s11 = scalar_lea.vmem (!%p2923_p8), [#allocation3], %s2099_s10  ;;  %p3263_p12 = scmp.ne.s32.totalorder (!%p2923_p8), %s3254_s28, 0 }
  0x3e   : > { %2793 = dma.done.wait (%p3263_p12), %s267_s9, 16384  }
  0x3f   : > { %2795 = vsyncadd (%p3263_p12), %s267_s9, 4294950912 }
  0x40   : > { %2797 = dma.done.wait (%p2903_p1), [#allocation7], 2048  }
  0x41   : > { %2799 = vsyncadd (%p2903_p1), [#allocation7], 4294965248  ;;  %v2556_v0 = vld [vmem:[%s2988_s11 + $0x78] sm:$0xff]   ;;  %v2560_v4 = vld [vmem:[%s2988_s11 + $0x70] sm:$0xff]   ;;  %p317_p1 = scmp.lt.s32.totalorder %s2818_s21, 1  ;;  %v605_v24 = vlaneseq  ;;  %vm2836_vm0 = vmmov 0  }
  0x42   : > { %v2557_v1 = vld [vmem:[%s2988_s11 + $0xf8] sm:$0xff]   ;;  %2246 = vmatprep.subr.bf16.mxu0 %v2556_v0  ;;  %v2561_v5 = vld [vmem:[%s2988_s11 + $0xf0] sm:$0xff]   ;;  %v2564_v8 = vld [vmem:[%s2988_s11 + $0x68] sm:$0xff]   ;;  %v2834_v22 = vmov 1966171168   ;;  %vm1812_vm1 = vcmask 1041409  }
  0x43   : > { %v2558_v2 = vld [vmem:[%s2988_s11 + $0x38] sm:$0xff]   ;;  %2268 = vmatprep.subr.bf16.mxu1 %v2557_v1  ;;  %v2562_v6 = vld [vmem:[%s2988_s11 + $0x30] sm:$0xff]   ;;  %v2565_v9 = vld [vmem:[%s2988_s11 + $0xe8] sm:$0xff]   ;;  %v603_v23 = vunpack.c.l.s4 %v2834_v22  ;;  %s3023_s3 = scalar_select %p317_p1, %s2818_s21, 1  ;;  %v606_v30 = vshrl.u32 %v605_v24, 7  ;;  %vm1815_vm2 = vcmask 1042434  }
  0x44   : > { %v2559_v3 = vld [vmem:[%s2988_s11 + $0xb8] sm:$0xff]   ;;  %2247 = vmatpush3.bf16.msra.mxu0 %v2558_v2  ;;  %v2563_v7 = vld [vmem:[%s2988_s11 + $0xb0] sm:$0xff]   ;;  %v2566_v10 = vld [vmem:[%s2988_s11 + $0x28] sm:$0xff]   ;;  %vm1818_vm3 = vcmask 1043459   ;;  %vm1821_vm4 = vcmask 1044484   ;;  %vm1824_vm5 = vcmask 1045509  }
  0x45   : > { %2269 = vmatpush3.bf16.msra.mxu1 %v2559_v3  ;;  %2248 = vmatprep.subr.bf16.mxu0 %v2560_v4  ;;  %v2567_v11 = vld [vmem:[%s2988_s11 + $0xa8] sm:$0xff]   ;;  %v2568_v12 = vld [vmem:[%s2988_s11 + $0x60] sm:$0xff]   ;;  %v2572_v16 = vld [vmem:[%s2988_s11 + $0x58] sm:$0xff]   ;;  %v604_v29 = vunpack.c.0.s8 %v603_v23  ;;  %s2245_s26 = sshll.u32 %s3023_s3, 3  ;;  %v3039_v37 = vsub.s32 0, %v606_v30  ;;  %v3042_v39 = vsub.s32 1, %v606_v30 }
  0x46   : > { %2270 = vmatprep.subr.bf16.mxu1 %v2561_v5  ;;  %v2569_v13 = vld [vmem:[%s2988_s11 + $0xe0] sm:$0xff]   ;;  %v2573_v17 = vld [vmem:[%s2988_s11 + $0xd8] sm:$0xff]   ;;  %v2576_v20 = vld [vmem:[%s2988_s11 + $0x50] sm:$0xff]   ;;  %s324_s12 = scalar_lea.vmem %s3244_s1, %s2245_s26  ;;  %s329_s27 = scalar_lea.vmem %s3245_s2, %s2245_s26  ;;  %vm1827_vm6 = vcmask 1046534   ;;  %vm1830_vm7 = vcmask 1047559  }
  0x47   : > { %v2570_v14 = vld [vmem:[%s2988_s11 + $0x20] sm:$0xff]   ;;  %v2574_v18 = vld [vmem:[%s2988_s11 + $0x18] sm:$0xff]   ;;  %v2577_v21 = vld [vmem:[%s2988_s11 + $0xd0] sm:$0xff]   ;;  %v607_v35 = vsub.s32 %v604_v29, %v606_v30  ;;  %s2101_s8 = sshll.u32 %s2984_s25, 3  ;;  %s2240_s16 = sshll.u32 %s2818_s21, 7 }
  0x48   : > { %2249 = vmatpush3.bf16.msra.mxu0 %v2562_v6  ;;  %v2571_v15 = vld [vmem:[%s2988_s11 + $0xa0] sm:$0xff]   ;;  %v2575_v19 = vld [vmem:[%s2988_s11 + $0x98] sm:$0xff]   ;;  %v2578_v25 = vld [vmem:[%s2988_s11 + $0x10] sm:$0xff]   ;;  %s313_s6 = scalar_lea.vmem [#allocation8], %s2101_s8  ;;  %s1966_s3 = scalar_lea.hbm %s3248_s5, %s2240_s16 }
  0x49   : > { %2271 = vmatpush3.bf16.msra.mxu1 %v2563_v7  ;;  %2250 = vmatprep.subr.bf16.mxu0 %v2564_v8  ;;  %v2579_v26 = vld [vmem:[%s2988_s11 + $0x90] sm:$0xff]   ;;  %v2580_v27 = vld [vmem:[%s2988_s11 + $0x48] sm:$0xff]   ;;  %v2584_v33 = vld [vmem:[%s2988_s11 + $0x40] sm:$0xff]   ;;  %s1968_s10 = sshll.u32 %s313_s6, 4  ;;  %s1955_s26 = scalar_lea.sflag [#allocation5], %s2984_s25  ;;  %s1969_s10 = int_to_ptr.vmem [resolvable:$true] %s1968_s10 }
  0x4a   : > { %2272 = vmatprep.subr.bf16.mxu1 %v2565_v9  ;;  %v2581_v28 = vld [vmem:[%s2988_s11 + $0xc8] sm:$0xff]   ;;  %v2585_v34 = vld [vmem:[%s2988_s11 + $0xc0] sm:$0xff]   ;;  %v2588_v41 = vld [vmem:[%s2988_s11 + $0x178] sm:$0xff]   ;;  %s2742_s28 = scalar_lea.vmem %s1969_s10, 128  ;;  %s2838_s30 = smov [#allocation8]  }
  0x4b   : > { %v2582_v31 = vld [vmem:[%s2988_s11 + $0x8] sm:$0xff]   ;;  %v2586_v36 = vld [vmem:[%s2988_s11] sm:$0xff]   ;;  %v2589_v44 = vld [vmem:[%s2988_s11 + $0x1f8] sm:$0xff]   ;;  %p2743_p8 = scmp.ne.s32.totalorder %s1969_s10, %s2742_s28 }
  0x4c   : > { %2251 = vmatpush3.bf16.msra.mxu0 %v2566_v10  ;;  %v2583_v32 = vld [vmem:[%s2988_s11 + $0x88] sm:$0xff]   ;;  %v2587_v38 = vld [vmem:[%s2988_s11 + $0x80] sm:$0xff]   ;;  %v2590_v51 = vld [vmem:[%s2988_s11 + $0x138] sm:$0xff]  }
  0x4d   : > { %2273 = vmatpush3.bf16.msra.mxu1 %v2567_v11  ;;  %2252 = vmatprep.subr.bf16.mxu0 %v2568_v12  ;;  %v2105_v40 = vld.sshfl [vmem:[%s324_s12] sm:$0xff pattern:$0x75316420]  ;;  %v2592_v53 = vld [vmem:[%s2988_s11 + $0x170] sm:$0xff]   ;;  %v2591_v57 = vld [vmem:[%s2988_s11 + $0x1b8] sm:$0xff]   ;;  %p2744_p10 = pnand %p2743_p8, %p2956_p13  ;;  %s2746_s12 = sshll.u32 %s2838_s30, 4  ;;  %s2747_s12 = int_to_ptr.vmem [resolvable:$false] %s2746_s12 }
  0x4e   : > { %2274 = vmatprep.subr.bf16.mxu1 %v2569_v13  ;;  %v601_v42 = vcombine.high %v2105_v40, %v2105_v40  ;;  %v3045_v43 = vrot.slane %v2105_v40, %v607_v35  ;;  %v2593_v59 = vld [vmem:[%s2988_s11 + $0x1f0] sm:$0xff]   ;;  %v2596_v62 = vld [vmem:[%s2988_s11 + $0x168] sm:$0xff]   ;;  %v2600_v3 = vld [vmem:[%s2988_s11 + $0x160] sm:$0xff]   ;;  %s2748_s21 = scalar_lea.vmem %s2747_s12, 256  ;;  %p2749_p2 = scmp.lt.s32.totalorder %s1969_s10, %s2747_s12 }
  0x4f   : > { %v2594_v61 = vld [vmem:[%s2988_s11 + $0x130] sm:$0xff]   ;;  %v2597_v1 = vld [vmem:[%s2988_s11 + $0x1e8] sm:$0xff]   ;;  %v2601_v5 = vld [vmem:[%s2988_s11 + $0x1e0] sm:$0xff]   ;;  %p2745_p0 = pneg %p2744_p10  ;;  %p2750_p3 = scmp.lt.s32.totalorder %s2748_s21, %s2742_s28 }
  0x50   : > { %2253 = vmatpush3.bf16.msra.mxu0 %v2570_v14  ;;  %v2106_v45 = vpack.i.b16 %v3045_v43, %v3045_v43  ;;  %v619_v46 = vunpack.i.h.s16 %v3045_v43  ;;  %v3051_v47 = vrot.slane %v601_v42, %v607_v35  ;;  %v2595_v0 = vld [vmem:[%s2988_s11 + $0x1b0] sm:$0xff]   ;;  %v2598_v2 = vld [vmem:[%s2988_s11 + $0x128] sm:$0xff]   ;;  %v2602_v6 = vld [vmem:[%s2988_s11 + $0x120] sm:$0xff]  }
  0x51   : > { %2275 = vmatpush3.bf16.msra.mxu1 %v2571_v15  ;;  %2254 = vmatprep.subr.bf16.mxu0 %v2572_v16  ;;  %v2599_v4 = vld [vmem:[%s2988_s11 + $0x1a8] sm:$0xff]   ;;  %v2604_v7 = vld [vmem:[%s2988_s11 + $0x158] sm:$0xff]   ;;  %v2603_v8 = vld [vmem:[%s2988_s11 + $0x1a0] sm:$0xff]   ;;  %p2751_p5 = por %p2750_p3, %p2749_p2 }
  0x52   : > { %2276 = vmatprep.subr.bf16.mxu1 %v2573_v17  ;;  %v634_v48 = vrot.slane %v2106_v45, %v3042_v39  ;;  %v773_v49 = vpack.i.b16 %v619_v46, %v619_v46  ;;  %v630_v50 = vrot.slane %v2106_v45, %v3039_v37  ;;  %v3058_v52 = vpack.i.b16 %v3051_v47, %v3051_v47  ;;  %v2605_v9 = vld [vmem:[%s2988_s11 + $0x1d8] sm:$0xff]   ;;  %v2608_v11 = vld [vmem:[%s2988_s11 + $0x150] sm:$0xff]   ;;  %v2612_v15 = vld [vmem:[%s2988_s11 + $0x148] sm:$0xff]  }
  0x53   : > { %v621_v54 = vunpack.i.h.s16 %v3051_v47  ;;  %v2606_v10 = vld [vmem:[%s2988_s11 + $0x118] sm:$0xff]   ;;  %v2609_v13 = vld [vmem:[%s2988_s11 + $0x1d0] sm:$0xff]   ;;  %v616_v17 = vcombine.high %v3045_v43, %v3045_v43  ;;  %v2617_v23 = vld [vmem:[%s2988_s11 + $0x1c0] sm:$0xff]   ;;  %p2752_p7 = pnand %p2751_p5, %p2745_p0 }
  0x54   : > { %2255 = vmatpush3.bf16.msra.mxu0 %v2574_v18  ;;  %765 = vmatprep.mubr.bf16.mxu0 %v634_v48  ;;  %v781_v55 = vrot.slane %v773_v49, %v3042_v39  ;;  %v777_v56 = vrot.slane %v773_v49, %v3039_v37  ;;  %v928_v58 = vrot.slane %v3058_v52, %v3042_v39  ;;  %v2607_v12 = vld [vmem:[%s2988_s11 + $0x198] sm:$0xff]   ;;  %v2610_v14 = vld [vmem:[%s2988_s11 + $0x110] sm:$0xff]   ;;  %v2613_v18 = vld [vmem:[%s2988_s11 + $0x1c8] sm:$0xff]  }
  0x55   : > { %2277 = vmatpush3.bf16.msra.mxu1 %v2575_v19  ;;  %2256 = vmatprep.subr.bf16.mxu0 %v2576_v20  ;;  %v3068_v60 = vpack.i.b16 %v621_v54, %v621_v54  ;;  %v2611_v16 = vld [vmem:[%s2988_s11 + $0x190] sm:$0xff]   ;;  %v2614_v19 = vld [vmem:[%s2988_s11 + $0x108] sm:$0xff]   ;;  %v2616_v20 = vld [vmem:[%s2988_s11 + $0x140] sm:$0xff]   ;;  %v623_v22 = vunpack.i.h.s16 %v616_v17  ;;  %v924_v29 = vrot.slane %v3058_v52, %v3039_v37 }
  0x56   : > { %2278 = vmatprep.subr.bf16.mxu1 %v2577_v21  ;;  %912 = vmatprep.mubr.bf16.mxu1 %v781_v55  ;;  %v2615_v21 = vld [vmem:[%s2988_s11 + $0x188] sm:$0xff]   ;;  %v2618_v24 = vld [vmem:[%s2988_s11 + $0x100] sm:$0xff]   ;;  %v2621_v30 = vld [vmem:[%s2988_s11 + $0x2f8] sm:$0xff]  }
  0x57   : > { %v1075_v63 = vrot.slane %v3068_v60, %v3042_v39  ;;  %v2623_v35 = vld [vmem:[%s2988_s11 + $0x2b8] sm:$0xff]   ;;  %v2626_v40 = vld [vmem:[%s2988_s11 + $0x230] sm:$0xff]   ;;  %v2629_v43 = vld [vmem:[%s2988_s11 + $0x2e8] sm:$0xff]  }
  0x58   : > { %2257 = vmatpush3.bf16.msra.mxu0 %v2578_v25  ;;  %v3099_v25 = vpack.i.b16 %v616_v17, %v616_v17  ;;  %v2627_v42 = vld [vmem:[%s2988_s11 + $0x2b0] sm:$0xff]   ;;  %v2632_v45 = vld [vmem:[%s2988_s11 + $0x260] sm:$0xff]   ;;  %v2631_v46 = vld [vmem:[%s2988_s11 + $0x2a8] sm:$0xff]  }
  0x59   : > { %2279 = vmatpush3.bf16.msra.mxu1 %v2579_v26  ;;  %2258 = vmatprep.subr.bf16.mxu0 %v2580_v27  ;;  %v2620_v26 = vld [vmem:[%s2988_s11 + $0x278] sm:$0xff]   ;;  %v2619_v27 = vld [vmem:[%s2988_s11 + $0x180] sm:$0xff]   ;;  %v2640_v54 = vld [vmem:[%s2988_s11 + $0x250] sm:$0xff]  }
  0x5a   : > { %2280 = vmatprep.subr.bf16.mxu1 %v2581_v28  ;;  %v3103_v28 = vpack.i.b16 %v623_v22, %v623_v22  ;;  %v2633_v48 = vld [vmem:[%s2988_s11 + $0x2e0] sm:$0xff]   ;;  %v2637_v52 = vld [vmem:[%s2988_s11 + $0x2d8] sm:$0xff]   ;;  %v2660_v17 = vld [vmem:[%s2988_s11 + $0x368] sm:$0xff]  }
  0x5b   : > { %v2634_v49 = vld [vmem:[%s2988_s11 + $0x220] sm:$0xff]   ;;  %v2639_v55 = vld [vmem:[%s2988_s11 + $0x298] sm:$0xff]  }
  0x5c   : > { %2259 = vmatpush3.bf16.msra.mxu0 %v2582_v31  ;;  %v2622_v31 = vld [vmem:[%s2988_s11 + $0x238] sm:$0xff]   ;;  %v2665_v22 = vld [vmem:[%s2988_s11 + $0x3e0] sm:$0xff]  }
  0x5d   : > { %2281 = vmatpush3.bf16.msra.mxu1 %v2583_v32  ;;  %2260 = vmatprep.subr.bf16.mxu0 %v2584_v33  ;;  %v1222_v32 = vrot.slane %v3099_v25, %v3042_v39  ;;  %v1071_v33 = vrot.slane %v3068_v60, %v3039_v37  ;;  %v617_v60 = vcombine.high %v3051_v47, %v3051_v47  ;;  %v2652_v47 = vld [vmem:[%s2988_s11 + $0x378] sm:$0xff]  }
  0x5e   : > { %2282 = vmatprep.subr.bf16.mxu1 %v2585_v34  ;;  %v2624_v34 = vld [vmem:[%s2988_s11 + $0x270] sm:$0xff]  }
  0x60   : > { %2261 = vmatpush3.bf16.msra.mxu0 %v2586_v36  ;;  %v1369_v36 = vrot.slane %v3103_v28, %v3042_v39 }
  0x61   : > { %2283 = vmatpush3.bf16.msra.mxu1 %v2587_v38  ;;  %2290 = vmatprep.subr.bf16.mxu0 %v2588_v41  ;;  %v2625_v38 = vld [vmem:[%s2988_s11 + $0x2f0] sm:$0xff]   ;;  %v2628_v41 = vld [vmem:[%s2988_s11 + $0x268] sm:$0xff]  }
  0x62   : > { %2312 = vmatprep.subr.bf16.mxu1 %v2589_v44  ;;  %v2630_v44 = vld [vmem:[%s2988_s11 + $0x228] sm:$0xff]  }
  0x63   : > { %766 = vmatmul.mubr.bf16.vlgmr.msra.gmra.mxu0 %v630_v50  ;;  %v2636_v50 = vld [vmem:[%s2988_s11 + $0x258] sm:$0xff]  }
  0x64   : > { %2291 = vmatpush3.bf16.msra.mxu0 %v2590_v51  ;;  %913 = vmatmul.mubr.bf16.vlgmr.msra.gmra.mxu1 %v777_v56  ;;  %v2635_v51 = vld [vmem:[%s2988_s11 + $0x2a0] sm:$0xff]   ;;  %v2641_v56 = vld [vmem:[%s2988_s11 + $0x2d0] sm:$0xff]  }
  0x65   : > { %2292 = vmatprep.subr.bf16.mxu0 %v2592_v53  ;;  %2313 = vmatpush3.bf16.msra.mxu1 %v2591_v57  ;;  %v2638_v53 = vld [vmem:[%s2988_s11 + $0x218] sm:$0xff]   ;;  %v2642_v57 = vld [vmem:[%s2988_s11 + $0x210] sm:$0xff]  }
  0x66   : > { %1059 = vmatprep.mubr.bf16.mxu0 %v928_v58  ;;  %2314 = vmatprep.subr.bf16.mxu1 %v2593_v59  ;;  %v2644_v58 = vld [vmem:[%s2988_s11 + $0x248] sm:$0xff]   ;;  %v2643_v59 = vld [vmem:[%s2988_s11 + $0x290] sm:$0xff]  }
  0x67   : > { %1206 = vmatprep.mubr.bf16.mxu1 %v1075_v63  ;;  %v2648_v63 = vld [vmem:[%s2988_s11 + $0x240] sm:$0xff]  }
  0x68   : > { %2293 = vmatpush3.bf16.msra.mxu0 %v2594_v61  ;;  %v2645_v61 = vld [vmem:[%s2988_s11 + $0x2c8] sm:$0xff]  }
  0x69   : > { %2294 = vmatprep.subr.bf16.mxu0 %v2596_v62  ;;  %2315 = vmatpush3.bf16.msra.mxu1 %v2595_v0  ;;  %v2646_v62 = vld [vmem:[%s2988_s11 + $0x208] sm:$0xff]  }
  0x6a   : > { %2316 = vmatprep.subr.bf16.mxu1 %v2597_v1  ;;  %v2647_v0 = vld [vmem:[%s2988_s11 + $0x288] sm:$0xff]   ;;  %v625_v1 = vunpack.i.h.s16 %v617_v60 }
  0x6c   : > { %2295 = vmatpush3.bf16.msra.mxu0 %v2598_v2  ;;  %v2649_v2 = vld [vmem:[%s2988_s11 + $0x2c0] sm:$0xff]  }
  0x6d   : > { %2296 = vmatprep.subr.bf16.mxu0 %v2600_v3  ;;  %2317 = vmatpush3.bf16.msra.mxu1 %v2599_v4  ;;  %v2650_v3 = vld [vmem:[%s2988_s11 + $0x200] sm:$0xff]   ;;  %v3145_v4 = vpack.i.b16 %v617_v60, %v617_v60  ;;  %v1841_v60 = vld [vmem:[#allocation6 + $0x8] sm:$0xff] }
  0x6e   : > { %2318 = vmatprep.subr.bf16.mxu1 %v2601_v5  ;;  %v2651_v5 = vld [vmem:[%s2988_s11 + $0x280] sm:$0xff]  }
  0x70   : > { %2297 = vmatpush3.bf16.msra.mxu0 %v2602_v6  ;;  %v3149_v6 = vpack.i.b16 %v625_v1, %v625_v1 }
  0x71   : > { %2298 = vmatprep.subr.bf16.mxu0 %v2604_v7  ;;  %2319 = vmatpush3.bf16.msra.mxu1 %v2603_v8  ;;  %v1218_v7 = vrot.slane %v3099_v25, %v3039_v37  ;;  %v2653_v8 = vld [vmem:[%s2988_s11 + $0x3f8] sm:$0xff]   ;;  %v2667_v25 = vld [vmem:[%s2988_s11 + $0x3a0] sm:$0xff]  }
  0x72   : > { %2320 = vmatprep.subr.bf16.mxu1 %v2605_v9  ;;  %v2654_v9 = vld [vmem:[%s2988_s11 + $0x338] sm:$0xff]  }
  0x74   : > { %2299 = vmatpush3.bf16.msra.mxu0 %v2606_v10  ;;  %v1516_v10 = vrot.slane %v3145_v4, %v3042_v39 }
  0x75   : > { %2300 = vmatprep.subr.bf16.mxu0 %v2608_v11  ;;  %2321 = vmatpush3.bf16.msra.mxu1 %v2607_v12  ;;  %v1365_v11 = vrot.slane %v3103_v28, %v3039_v37  ;;  %v2656_v12 = vld [vmem:[%s2988_s11 + $0x370] sm:$0xff]  }
  0x76   : > { %2322 = vmatprep.subr.bf16.mxu1 %v2609_v13  ;;  %v2655_v13 = vld [vmem:[%s2988_s11 + $0x3b8] sm:$0xff]   ;;  %v2672_v28 = vld [vmem:[%s2988_s11 + $0x350] sm:$0xff]  }
  0x78   : > { %2301 = vmatpush3.bf16.msra.mxu0 %v2610_v14  ;;  %v1663_v14 = vrot.slane %v3149_v6, %v3042_v39  ;;  %v2661_v39 = vld [vmem:[%s2988_s11 + $0x3e8] sm:$0xff]  }
  0x79   : > { %2302 = vmatprep.subr.bf16.mxu0 %v2612_v15  ;;  %2323 = vmatpush3.bf16.msra.mxu1 %v2611_v16  ;;  %v2657_v15 = vld [vmem:[%s2988_s11 + $0x3f0] sm:$0xff]  }
  0x7a   : > { %2324 = vmatprep.subr.bf16.mxu1 %v2613_v18  ;;  %v2658_v16 = vld [vmem:[%s2988_s11 + $0x330] sm:$0xff]  }
  0x7b   : > { %v2659_v18 = vld [vmem:[%s2988_s11 + $0x3b0] sm:$0xff]  }
  0x7c   : > { %2303 = vmatpush3.bf16.msra.mxu0 %v2614_v19  ;;  %v2662_v19 = vld [vmem:[%s2988_s11 + $0x328] sm:$0xff]  }
  0x7d   : > { %2304 = vmatprep.subr.bf16.mxu0 %v2616_v20  ;;  %2325 = vmatpush3.bf16.msra.mxu1 %v2615_v21  ;;  %v2664_v20 = vld [vmem:[%s2988_s11 + $0x360] sm:$0xff]   ;;  %v2663_v21 = vld [vmem:[%s2988_s11 + $0x3a8] sm:$0xff]  }
  0x7e   : > { %2326 = vmatprep.subr.bf16.mxu1 %v2617_v23  ;;  %v2666_v23 = vld [vmem:[%s2988_s11 + $0x320] sm:$0xff]  }
  0x80   : > { %2305 = vmatpush3.bf16.msra.mxu0 %v2618_v24  ;;  %v2668_v24 = vld [vmem:[%s2988_s11 + $0x358] sm:$0xff]  }
  0x81   : > { %2334 = vmatprep.subr.bf16.mxu0 %v2620_v26  ;;  %2327 = vmatpush3.bf16.msra.mxu1 %v2619_v27  ;;  %v2669_v26 = vld [vmem:[%s2988_s11 + $0x3d8] sm:$0xff]  }
  0x82   : > { %2356 = vmatprep.subr.bf16.mxu1 %v2621_v30  ;;  %v2670_v27 = vld [vmem:[%s2988_s11 + $0x318] sm:$0xff]   ;;  %v2673_v30 = vld [vmem:[%s2988_s11 + $0x3d0] sm:$0xff]  }
  0x83   : > { %1060 = vmatmul.mubr.bf16.vlgmr.msra.gmra.mxu0 %v924_v29  ;;  %v2671_v29 = vld [vmem:[%s2988_s11 + $0x398] sm:$0xff]  }
  0x84   : > { %2335 = vmatpush3.bf16.msra.mxu0 %v2622_v31  ;;  %1353 = vmatprep.mubr.bf16.mxu0 %v1222_v32  ;;  %v2674_v31 = vld [vmem:[%s2988_s11 + $0x310] sm:$0xff]   ;;  %v2676_v32 = vld [vmem:[%s2988_s11 + $0x348] sm:$0xff]  }
  0x85   : > { %1207 = vmatmul.mubr.bf16.vlgmr.msra.gmra.mxu1 %v1071_v33  ;;  %2336 = vmatprep.subr.bf16.mxu0 %v2624_v34  ;;  %v2675_v33 = vld [vmem:[%s2988_s11 + $0x390] sm:$0xff]   ;;  %v2677_v34 = vld [vmem:[%s2988_s11 + $0x3c8] sm:$0xff]  }
  0x86   : > { %2357 = vmatpush3.bf16.msra.mxu1 %v2623_v35  ;;  %1500 = vmatprep.mubr.bf16.mxu1 %v1369_v36  ;;  %v2678_v35 = vld [vmem:[%s2988_s11 + $0x308] sm:$0xff]   ;;  %v2680_v36 = vld [vmem:[%s2988_s11 + $0x340] sm:$0xff]  }
  0x87   : > { %2358 = vmatprep.subr.bf16.mxu1 %v2625_v38  ;;  %v2679_v38 = vld [vmem:[%s2988_s11 + $0x388] sm:$0xff]  }
  0x88   : > { %2337 = vmatpush3.bf16.msra.mxu0 %v2626_v40  ;;  %v2681_v40 = vld [vmem:[%s2988_s11 + $0x3c0] sm:$0xff]  }
  0x89   : > { %2338 = vmatprep.subr.bf16.mxu0 %v2628_v41  ;;  %v2682_v41 = vld [vmem:[%s2988_s11 + $0x300] sm:$0xff]  }
  0x8a   : > { %2359 = vmatpush3.bf16.msra.mxu1 %v2627_v42  ;;  %v2683_v42 = vld [vmem:[%s2988_s11 + $0x380] sm:$0xff]  }
  0x8b   : > { %2360 = vmatprep.subr.bf16.mxu1 %v2629_v43  ;;  %v1512_v43 = vrot.slane %v3145_v4, %v3039_v37 }
  0x8c   : > { %2339 = vmatpush3.bf16.msra.mxu0 %v2630_v44  ;;  %v1659_v44 = vrot.slane %v3149_v6, %v3039_v37  ;;  %v1849_v37 = vld [vmem:[#allocation6 + $0x48] sm:$0xff] }
  0x8d   : > { %2340 = vmatprep.subr.bf16.mxu0 %v2632_v45  ;;  %v1855_v45 = vld [vmem:[#allocation6 + $0x78] sm:$0xff] }
  0x8e   : > { %2361 = vmatpush3.bf16.msra.mxu1 %v2631_v46  ;;  %v2835_v46 = vmov 0.0  }
  0x8f   : > { %2362 = vmatprep.subr.bf16.mxu1 %v2633_v48  ;;  %v1854_v48 = vld [vmem:[#allocation6 + $0x70] sm:$0xff] }
  0x90   : > { %2341 = vmatpush3.bf16.msra.mxu0 %v2634_v49  ;;  %v1853_v49 = vld [vmem:[#allocation6 + $0x68] sm:$0xff] }
  0x91   : > { %2342 = vmatprep.subr.bf16.mxu0 %v2636_v50  ;;  %v1852_v50 = vld [vmem:[#allocation6 + $0x60] sm:$0xff] }
  0x92   : > { %2363 = vmatpush3.bf16.msra.mxu1 %v2635_v51  ;;  %v1851_v51 = vld [vmem:[#allocation6 + $0x58] sm:$0xff] }
  0x93   : > { %2364 = vmatprep.subr.bf16.mxu1 %v2637_v52  ;;  %v1850_v52 = vld [vmem:[#allocation6 + $0x50] sm:$0xff] }
  0x94   : > { %2343 = vmatpush3.bf16.msra.mxu0 %v2638_v53  ;;  %v1848_v53 = vld [vmem:[#allocation6 + $0x40] sm:$0xff] }
  0x95   : > { %2344 = vmatprep.subr.bf16.mxu0 %v2640_v54  ;;  %v1847_v54 = vld [vmem:[#allocation6 + $0x38] sm:$0xff] }
  0x96   : > { %2365 = vmatpush3.bf16.msra.mxu1 %v2639_v55  ;;  %v1846_v55 = vld [vmem:[#allocation6 + $0x30] sm:$0xff] }
  0x97   : > { %2366 = vmatprep.subr.bf16.mxu1 %v2641_v56  ;;  %v1845_v56 = vld [vmem:[#allocation6 + $0x28] sm:$0xff] }
  0x98   : > { %2345 = vmatpush3.bf16.msra.mxu0 %v2642_v57  ;;  %v1844_v57 = vld [vmem:[#allocation6 + $0x20] sm:$0xff] }
  0x99   : > { %2346 = vmatprep.subr.bf16.mxu0 %v2644_v58  ;;  %v1843_v58 = vld [vmem:[#allocation6 + $0x18] sm:$0xff] }
  0x9a   : > { %2367 = vmatpush3.bf16.msra.mxu1 %v2643_v59  ;;  %v1842_v59 = vld [vmem:[#allocation6 + $0x10] sm:$0xff] }
  0x9b   : > { %2368 = vmatprep.subr.bf16.mxu1 %v2645_v61  ;;  %v1840_v61 = vld [vmem:[#allocation6] sm:$0xff] }
  0x9c   : > { %2347 = vmatpush3.bf16.msra.mxu0 %v2646_v62  ;;  %v2837_v62 = vmov 0  }
  0x9d   : > { %2348 = vmatprep.subr.bf16.mxu0 %v2648_v63  ;;  %2555 = vset.pattern.permute.xlu0 %v2837_v62  ;;  %v1838_v63 = vld [vmem:[%s329_s27] sm:$0xff] }
  0x9e   : > { %2369 = vmatpush3.bf16.msra.mxu1 %v2647_v0  ;;  %v1939_v0 = vmax.f32 %v1838_v63, 1e-09 }
  0x9f   : > { %2370 = vmatprep.subr.bf16.mxu1 %v2649_v2 }
  0xa0   : > { %2349 = vmatpush3.bf16.msra.mxu0 %v2650_v3  ;;  %1942 = vperm.xlu0 %2555, %v1939_v0  }
  0xa1   : > { %2378 = vmatprep.subr.bf16.mxu0 %v2652_v47 }
  0xa2   : > { %2371 = vmatpush3.bf16.msra.mxu1 %v2651_v5 }
  0xa3   : > { %1354 = vmatmul.mubr.bf16.vlgmr.msra.gmra.mxu0 %v1218_v7  ;;  %2400 = vmatprep.subr.bf16.mxu1 %v2653_v8 }
  0xa4   : > { %2379 = vmatpush3.bf16.msra.mxu0 %v2654_v9  ;;  %1647 = vmatprep.mubr.bf16.mxu0 %v1516_v10 }
  0xa5   : > { %1501 = vmatmul.mubr.bf16.vlgmr.msra.gmra.mxu1 %v1365_v11  ;;  %2380 = vmatprep.subr.bf16.mxu0 %v2656_v12 }
  0xa6   : > { %2401 = vmatpush3.bf16.msra.mxu1 %v2655_v13  ;;  %1794 = vmatprep.mubr.bf16.mxu1 %v1663_v14 }
  0xa7   : > { %2402 = vmatprep.subr.bf16.mxu1 %v2657_v15  ;;  %1859 = vperm.xlu0 %2555, %v1838_v63  }
  0xa8   : > { %2381 = vmatpush3.bf16.msra.mxu0 %v2658_v16 }
  0xa9   : > { %2382 = vmatprep.subr.bf16.mxu0 %v2660_v17 }
  0xaa   : > { %2403 = vmatpush3.bf16.msra.mxu1 %v2659_v18 }
  0xab   : > { %2404 = vmatprep.subr.bf16.mxu1 %v2661_v39 }
  0xac   : > { %2383 = vmatpush3.bf16.msra.mxu0 %v2662_v19 }
  0xad   : > { %2384 = vmatprep.subr.bf16.mxu0 %v2664_v20 }
  0xae   : > { %2405 = vmatpush3.bf16.msra.mxu1 %v2663_v21 }
  0xaf   : > { %2406 = vmatprep.subr.bf16.mxu1 %v2665_v22 }
  0xb0   : > { %2385 = vmatpush3.bf16.msra.mxu0 %v2666_v23 }
  0xb1   : > { %2386 = vmatprep.subr.bf16.mxu0 %v2668_v24 }
  0xb2   : > { %2407 = vmatpush3.bf16.msra.mxu1 %v2667_v25 }
  0xb3   : > { %2408 = vmatprep.subr.bf16.mxu1 %v2669_v26 }
  0xb4   : > { %2387 = vmatpush3.bf16.msra.mxu0 %v2670_v27 }
  0xb5   : > { %2388 = vmatprep.subr.bf16.mxu0 %v2672_v28 }
  0xb6   : > { %2409 = vmatpush3.bf16.msra.mxu1 %v2671_v29 }
  0xb7   : > { %2410 = vmatprep.subr.bf16.mxu1 %v2673_v30 }
  0xb8   : > { %2389 = vmatpush3.bf16.msra.mxu0 %v2674_v31 }
  0xb9   : > { %2390 = vmatprep.subr.bf16.mxu0 %v2676_v32 }
  0xba   : > { %2411 = vmatpush3.bf16.msra.mxu1 %v2675_v33 }
  0xbb   : > { %2412 = vmatprep.subr.bf16.mxu1 %v2677_v34 }
  0xbc   : > { %2391 = vmatpush3.bf16.msra.mxu0 %v2678_v35 }
  0xbd   : > { %2392 = vmatprep.subr.bf16.mxu0 %v2680_v36 }
  0xbe   : > { %2413 = vmatpush3.bf16.msra.mxu1 %v2679_v38 }
  0xbf   : > { %2414 = vmatprep.subr.bf16.mxu1 %v2681_v40 }
  0xc0   : > { %2393 = vmatpush3.bf16.msra.mxu0 %v2682_v41 }
  0xc1   : > { %2439 = vmatprep.subr.mxu0 %v2835_v46 }
  0xc2   : > { %2415 = vmatpush3.bf16.msra.mxu1 %v2683_v42 }
  0xc3   : > { %1648 = vmatmul.mubr.bf16.vlgmr.msra.gmra.mxu0 %v1512_v43 }
  0xc4   : > { %2440 = vmatpush3.msra.mxu0 %v1855_v45  ;;  %2471 = vmatprep.mubr.msk.f32.mxu0 %vm2836_vm0, %v2835_v46 }
  0xc5   : > { %1795 = vmatmul.mubr.bf16.vlgmr.msra.gmra.mxu1 %v1659_v44  ;;  %2441 = vmatprep.subr.mxu0 %v2835_v46 }
  0xc6   : > { %2442 = vmatpush3.msra.mxu0 %v1854_v48 }
  0xc7   : > { %2443 = vmatprep.subr.mxu0 %v2835_v46 }
  0xc8   : > { %2444 = vmatpush3.msra.mxu0 %v1853_v49 }
  0xc9   : > { %2445 = vmatprep.subr.mxu0 %v2835_v46 }
  0xca   : > { %2446 = vmatpush3.msra.mxu0 %v1852_v50 }
  0xcb   : > { %2447 = vmatprep.subr.mxu0 %v2835_v46 }
  0xcc   : > { %2448 = vmatpush3.msra.mxu0 %v1851_v51 }
  0xcd   : > { %2449 = vmatprep.subr.mxu0 %v2835_v46 }
  0xce   : > { %2450 = vmatpush3.msra.mxu0 %v1850_v52 }
  0xcf   : > { %2451 = vmatprep.subr.mxu0 %v2835_v46 }
  0xd0   : > { %2452 = vmatpush3.msra.mxu0 %v1849_v37 }
  0xd1   : > { %2453 = vmatprep.subr.mxu0 %v2835_v46 }
  0xd2   : > { %2454 = vmatpush3.msra.mxu0 %v1848_v53 }
  0xd3   : > { %2455 = vmatprep.subr.mxu0 %v2835_v46 }
  0xd4   : > { %2456 = vmatpush3.msra.mxu0 %v1847_v54 }
  0xd5   : > { %2457 = vmatprep.subr.mxu0 %v2835_v46 }
  0xd6   : > { %2458 = vmatpush3.msra.mxu0 %v1846_v55 }
  0xd7   : > { %2459 = vmatprep.subr.mxu0 %v2835_v46 }
  0xd8   : > { %2460 = vmatpush3.msra.mxu0 %v1845_v56  ;;  %v2238_v56 = vld [vmem:[%s3247_s4] ss:$0 sm:$0xff] }
  0xd9   : > { %2461 = vmatprep.subr.mxu0 %v2835_v46 }
  0xda   : > { %2462 = vmatpush3.msra.mxu0 %v1844_v57 }
  0xdb   : > { %2463 = vmatprep.subr.mxu0 %v2835_v46 }
  0xdc   : > { %2464 = vmatpush3.msra.mxu0 %v1843_v58 }
  0xdd   : > { %2465 = vmatprep.subr.mxu0 %v2835_v46 }
  0xde   : > { %2466 = vmatpush3.msra.mxu0 %v1842_v59 }
  0xdf   : > { %2467 = vmatprep.subr.mxu0 %v2835_v46 }
  0xe0   : > { %2468 = vmatpush3.msra.mxu0 %v1841_v60 }
  0xe1   : > { %2469 = vmatprep.subr.mxu0 %v2835_v46 }
  0xe2   : > { %2470 = vmatpush3.msra.mxu0 %v1840_v61 }
 0x11b   : > { %v1943_v55 = vpop.permute.xlu0 %1942 }
 0x11c   : > { %2684 = vrcp.f32 %v1943_v55 }
 0x122   : > { %v1860_v57 = vpop.permute.xlu0 %1859 }
 0x123   : > { %v2262_v1 = vpop.f32.mrf.mxu0  ;;  %v1868_v58 = vmul.f32 %v2238_v56, %v1860_v57 }
 0x124   : > { %v2284_v2 = vpop.f32.mrf.mxu1 }
 0x125   : > { %v2263_v3 = vpop.f32.mrf.mxu0 }
 0x126   : > { %v2264_v4 = vadd.f32 %v2263_v3, %v2262_v1  ;;  %v2285_v47 = vpop.f32.mrf.mxu1 }
 0x127   : > { %v2265_v5 = vpop.f32.mrf.mxu0  ;;  %v2286_v6 = vadd.f32 %v2285_v47, %v2284_v2 }
 0x128   : > { %v2287_v7 = vpop.f32.mrf.mxu1 }
 0x129   : > { %v2266_v8 = vpop.f32.mrf.mxu0  ;;  %v1811_v9 = vrot.slane %v2286_v6, 7  ;;  %v2685_v59 = vpop.eup %2684 }
 0x12a   : > { %v2288_v10 = vpop.f32.mrf.mxu1 }
 0x12b   : > { %v1813_v11 = vsel %vm1812_vm1, %v1811_v9, %v2264_v4 }
 0x143   : > { %v2306_v12 = vpop.f32.mrf.mxu0 }
 0x145   : > { %v2328_v13 = vpop.f32.mrf.mxu1  ;;  %v2307_v14 = vpop.f32.mrf.mxu0 }
 0x146   : > { %v2308_v27 = vadd.f32 %v2307_v14, %v2306_v12 }
 0x147   : > { %v2329_v15 = vpop.f32.mrf.mxu1  ;;  %v2309_v16 = vpop.f32.mrf.mxu0 }
 0x148   : > { %v2330_v28 = vadd.f32 %v2329_v15, %v2328_v13  ;;  %v1814_v29 = vrot.slane %v2308_v27, 6 }
 0x149   : > { %v2331_v17 = vpop.f32.mrf.mxu1  ;;  %v2310_v18 = vpop.f32.mrf.mxu0 }
 0x14a   : > { %v1817_v31 = vrot.slane %v2330_v28, 5  ;;  %v1816_v33 = vsel %vm1815_vm2, %v1814_v29, %v1813_v11 }
 0x14b   : > { %v2332_v39 = vpop.f32.mrf.mxu1 }
 0x14c   : > { %v1819_v36 = vsel %vm1818_vm3, %v1817_v31, %v1816_v33 }
 0x163   : > { %v2350_v19 = vpop.f32.mrf.mxu0 }
 0x165   : > { %v2372_v20 = vpop.f32.mrf.mxu1  ;;  %v2351_v21 = vpop.f32.mrf.mxu0 }
 0x166   : > { %v2352_v30 = vadd.f32 %v2351_v21, %v2350_v19 }
 0x167   : > { %v2373_v22 = vpop.f32.mrf.mxu1  ;;  %v2353_v23 = vpop.f32.mrf.mxu0 }
 0x168   : > { %v2374_v32 = vadd.f32 %v2373_v22, %v2372_v20  ;;  %v1820_v34 = vrot.slane %v2352_v30, 4 }
 0x169   : > { %v2375_v24 = vpop.f32.mrf.mxu1  ;;  %v2354_v25 = vpop.f32.mrf.mxu0 }
 0x16a   : > { %v1823_v38 = vrot.slane %v2374_v32, 3  ;;  %v1822_v42 = vsel %vm1821_vm4, %v1820_v34, %v1819_v36 }
 0x16b   : > { %v2376_v26 = vpop.f32.mrf.mxu1 }
 0x16c   : > { %v1825_v49 = vsel %vm1824_vm5, %v1823_v38, %v1822_v42 }
 0x183   : > { %v2394_v35 = vpop.f32.mrf.mxu0 }
 0x185   : > { %v2416_v40 = vpop.f32.mrf.mxu1  ;;  %v2395_v41 = vpop.f32.mrf.mxu0 }
 0x186   : > { %v2396_v43 = vadd.f32 %v2395_v41, %v2394_v35 }
 0x187   : > { %v2417_v44 = vpop.f32.mrf.mxu1  ;;  %v2397_v45 = vpop.f32.mrf.mxu0 }
 0x188   : > { %v1826_v46 = vrot.slane %v2396_v43, 2  ;;  %v2418_v48 = vadd.f32 %v2417_v44, %v2416_v40 }
 0x189   : > { %v2419_v50 = vpop.f32.mrf.mxu1  ;;  %v2398_v51 = vpop.f32.mrf.mxu0 }
 0x18a   : > { %v1828_v52 = vsel %vm1827_vm6, %v1826_v46, %v1825_v49  ;;  %v1829_v37 = vrot.slane %v2418_v48, 1 }
 0x18b   : > { %v2420_v53 = vpop.f32.mrf.mxu1 }
 0x18c   : > { %v1831_v54 = vsel %vm1830_vm7, %v1829_v37, %v1828_v52 }
 0x18d   : > { %2472 = vmatmul.mubr.f32.vlgmr.msra.gmra.mxu0 %v1831_v54 }
 0x24d   : > { %v1935_v60 = vpop.f32.mrf.mxu0 }
 0x24e   : > { %v1936_v61 = vadd.f32 %v1935_v60, %v1868_v58 }
 0x24f   : > { %v2473_v62 = vpop.f32.mrf.mxu0 }
 0x250   : > { %v1946_v63 = vmul.f32 %v2685_v59, %v1936_v61 }
 0x252   : > { %v1947_v0 = vmul.f32 %v1946_v63, %v1946_v63 }
 0x254   : > { %1948 = vadd.xlane.f32.xlu1 %v1947_v0 }
 0x2dd   : > { %v1949_v1 = vpop.xlane.xlu1 %1948 }
 0x2de   : > { %v1950_v2 = vmax.f32 %v1949_v1, 1e-24 }
 0x2e0   : > { %2686 = vrsqrt.f32 %v1950_v2 }
 0x2ed   : > { %v2687_v3 = vpop.eup %2686 }
 0x2ee   : > { %v1952_v4 = vmul.f32 %v2687_v3, %v1946_v63 }
 0x2f0   : > { %1953 = vst [vmem:[%s313_s6] sm:$0xff] %v1952_v4 }
 0x2f1   : > { %2755 = shalt.err (!%p2752_p7)
}
 0x2f2   : > { %s2756_s13 = scalar_lea.hbm %s1966_s3, 128  ;;  %s2760_s27 = scalar_lea.hbm %s3248_s5, 256 }
 0x2f3   : > { %p2757_p6 = scmp.ne.s32.totalorder %s1966_s3, %s2756_s13  ;;  %p2761_p11 = scmp.lt.s32.totalorder %s1966_s3, %s3248_s5 }
 0x2f4   : > { %p2762_p12 = scmp.lt.s32.totalorder %s2760_s27, %s2756_s13 }
 0x2f5   : > { %p2758_p4 = pnand %p2757_p6, %p2956_p13 }
 0x2f6   : > { %p2763_p1 = por %p2762_p12, %p2761_p11 }
 0x2f7   : > { %p2759_p9 = pneg %p2758_p4 }
 0x2f9   : > { %p2764_p8 = pnand %p2763_p1, %p2759_p9 }
 0x2fb   : > { %2767 = shalt.err (!%p2764_p8)
}
 0x2fc   : > { %2480 = dma.vmem_to_hbm [thread:$0]  (%p2956_p13), %s1969_s10, 128, %s1966_s3, %s1955_s26  }
 0x2fd PF: > { %s1980_s8 = sand.u32 1, %s2806_s18   ;;  %p3264_p10 = scmp.ne.s32.totalorder %s3255_s29, 0 }
 0x2fe   : > { %p3265_p0 = scmp.ge.s32.totalorder %s2826_s23, 2  ;;  %s1981_s16 = scalar_lea.sflag [#allocation5], %s1980_s8 }
 0x300   : > { %p2491_p2 = pnand %p3265_p0, %p3264_p10 }
 0x302   : > { %p2492_p3 = pneg %p2491_p2 }
 0x304   : > { %2801 = dma.done.wait (%p2492_p3), %s1981_s16, 128  }
 0x305   : > { %2803 = vsyncadd (%p2492_p3), %s1981_s16, 4294967168  ;;  %s22_s23 = sadd.s32 1, %s2826_s23   ;;  %s3266_s17 = sld [smem:[#allocation12_spill]] }
 0x306   : > { %p19_p5 = scmp.ge.s32.totalorder %s22_s23, 4   ;;  %s3267_s18 = smov %s2810_s19 }
 0x307   : > { %s3268_s19 = smov %s2814_s20  ;;  %s3269_s20 = smov %s2965_s7 }
 0x308   : > { %s3270_s21 = smov %s2822_s22  ;;  %21 = sbr.rel (!%p19_p5) target bundleno = 9 (0x9), region = 103 }
 0x30b   : > { %s3271_s22 = smov %s3266_s17 }
 0x30d   :  { %1986 = vsyncpa [#allocation4], 1 }
 0x30e   :  { %1988 = vsyncpa [#allocation4 + $0x1], 1 }
 0x30f   :  { %1989 = vsyncpa [#allocation7], 1 }
 0x310   :  { %1990 = vsyncpa [#allocation5], 1 }
 0x311   :  { %1992 = vsyncpa [#allocation5 + $0x1], 1 }

</bundles_post_ra>
